<compile_context>
chip_gen: v6e
topology: v6e:2x2x1
jax: 0.10.0
libtpu: 0.0.40
codegen_flags: <defaults>
</compile_context>

<pallas_src>
import functools
import math

import jax
import jax.numpy as jnp
from jax.experimental import pallas as pl
from jax.experimental.pallas import tpu as pltpu


# ----------------------------------------------------------------------------
# Pallas kernel: Bt batch samples per program, channels on sublanes,
# lane-stacked (sample-major) columns on lanes.
# ----------------------------------------------------------------------------
def _tcn_block_kernel(x_ref, w1_ref, b1_ref, w2_ref, b2_ref, wr_ref, br_ref,
                      out_ref, xp_ref, rhs1_ref, h1_ref, rhs2_ref, *,
                      kernel_size, dilation, pad_left, pad_right, out_len,
                      batch_tile, compute_dtype):
    K, d = kernel_size, dilation
    L = out_len
    P = pad_left + pad_right                    # (K-1)*d
    Lp = L + P                                  # conv2's padded input length
    Bt = batch_tile
    Cin = x_ref.shape[1]
    Cout = out_ref.shape[1]

    # ---- in-kernel zero padding (halo) of this step's input tile -----------
    # xp[t] = x[t] padded by (2*pad_left, 2*pad_right) along L.  Margins are
    # rewritten every step (no reliance on program_id==0 init), so the kernel
    # is correct under megacore / "parallel" grid scheduling.
    if pad_left > 0:
        xp_ref[:, :, 0:2 * pad_left] = jnp.zeros(
            (Bt, Cin, 2 * pad_left), jnp.float32)
    if pad_right > 0:
        xp_ref[:, :, 2 * pad_left + L:] = jnp.zeros(
            (Bt, Cin, 2 * pad_right), jnp.float32)
    xp_ref[:, :, 2 * pad_left:2 * pad_left + L] = x_ref[...]

    # ---- stage fused K-tap RHS for conv1: (K*Cin, Bt*Lp) --------------------
    # row block k = tap k; column block t = sample t (lane-stacked).
    for k in range(K):
        for t in range(Bt):
            rhs1_ref[k * Cin:(k + 1) * Cin, t * Lp:(t + 1) * Lp] = \
                xp_ref[t, :, k * d:k * d + Lp]

    # ---- conv1 + bias + ReLU on conv2's padded range, one MXU matmul -------
    e1 = jnp.dot(w1_ref[...], rhs1_ref[...].astype(compute_dtype),
                 preferred_element_type=jnp.float32) + b1_ref[...]
    h1_ref[...] = jnp.maximum(e1, 0.0)          # (Cout, Bt*Lp), dropout = id

    # explicit ZeroPadding1d(relu(conv1(x))): zero the per-sample margins
    for t in range(Bt):
        if pad_left > 0:
            h1_ref[:, t * Lp:t * Lp + pad_left] = jnp.zeros(
                (Cout, pad_left), jnp.float32)
        if pad_right > 0:
            h1_ref[:, t * Lp + pad_left + L:(t + 1) * Lp] = jnp.zeros(
                (Cout, pad_right), jnp.float32)

    # ---- stage fused K-tap RHS for conv2: (K*Cout, Bt*L) --------------------
    for k in range(K):
        for t in range(Bt):
            rhs2_ref[k * Cout:(k + 1) * Cout, t * L:(t + 1) * L] = \
                h1_ref[:, t * Lp + k * d:t * Lp + k * d + L]

    # ---- conv2 + bias + ReLU (dropout = id) ---------------------------------
    h2 = jnp.dot(w2_ref[...], rhs2_ref[...].astype(compute_dtype),
                 preferred_element_type=jnp.float32) + b2_ref[...]
    h2 = jnp.maximum(h2, 0.0)                   # (Cout, Bt*L)

    # ---- residual (1x1 resample conv) on the lane-stacked unpadded input ----
    xres = jnp.concatenate([x_ref[t] for t in range(Bt)], axis=1)  # (Cin, Bt*L)
    res = jnp.dot(wr_ref[...], xres.astype(compute_dtype),
                  preferred_element_type=jnp.float32) + br_ref[...]

    # ---- final ReLU, lane-dense store ---------------------------------------
    out_ref[0] = jnp.maximum(h2 + res, 0.0).astype(out_ref.dtype)


# ----------------------------------------------------------------------------
# Wrapper helpers
# ----------------------------------------------------------------------------
def _choose_batch_tile(B, L, target_lanes=128, max_lanes=2048):
    """Smallest divisor of B that makes the output slab >= 128 lanes wide,
    otherwise the largest divisor that still fits the lane budget."""
    divisors = [b for b in range(1, B + 1) if B % b == 0]
    for b in divisors:
        if target_lanes <= b * L <= max_lanes:
            return b
    fitting = [b for b in divisors if b * L <= max_lanes]
    return fitting[-1] if fitting else 1


def _vmem_limit_bytes():
    """Generation-aware VMEM budget (v5e/v6e: 128 MiB, v7x: 64 MiB)."""
    cap = None
    try:
        info = pltpu.get_tpu_info()
        cap = getattr(info, "vmem_capacity_bytes", None)
    except Exception:
        cap = None
    if not cap:
        cap = 64 * 1024 * 1024          # conservative: v7x per-core VMEM
    return int(min(cap * 3 // 4, 100 * 1024 * 1024))


def cast_weights(params, compute_dtype):
    """One-time weight cast so the hot path issues no per-call converts."""
    out = dict(params)
    for k in ("w1m", "w2m", "wr"):
        out[k] = params[k].astype(compute_dtype)
    return out


# ----------------------------------------------------------------------------
# Wrapper
# ----------------------------------------------------------------------------
def tcn_block_forward(x_ncw, params, *, kernel_size, dilation,
                      compute_dtype=jnp.bfloat16, out_dtype=None,
                      batch_tile=None):
    """x_ncw: (B, Cin, L), PyTorch NCW layout.  Returns (B, Cout, L)."""
    B, Cin, L = x_ncw.shape
    Cout = params["w1m"].shape[0]
    pad_l = math.floor((kernel_size - 1) * dilation / 2)
    pad_r = math.ceil((kernel_size - 1) * dilation / 2)
    P = pad_l + pad_r
    Lp, Lp2 = L + P, L + 2 * P
    out_dtype = x_ncw.dtype if out_dtype is None else out_dtype

    Bt = batch_tile if batch_tile is not None else _choose_batch_tile(B, L)
    assert B % Bt == 0, "batch_tile must divide the batch size"
    nB = B // Bt

    # MXU operands in compute_dtype (no-op converts if pre-cast with
    # cast_weights); biases / accumulation stay f32.
    w1m = params["w1m"].astype(compute_dtype)
    w2m = params["w2m"].astype(compute_dtype)
    wr = params["wr"].astype(compute_dtype)

    kernel = functools.partial(
        _tcn_block_kernel, kernel_size=kernel_size, dilation=dilation,
        pad_left=pad_l, pad_right=pad_r, out_len=L, batch_tile=Bt,
        compute_dtype=compute_dtype)

    out = pl.pallas_call(
        kernel,
        out_shape=jax.ShapeDtypeStruct((nB, Cout, Bt * L), out_dtype),
        grid_spec=pltpu.PrefetchScalarGridSpec(
            num_scalar_prefetch=0,
            grid=(nB,),
            in_specs=[
                pl.BlockSpec((Bt, Cin, L), lambda g: (g, 0, 0)),            # x
                pl.BlockSpec((Cout, kernel_size * Cin), lambda g: (0, 0)),  # w1
                pl.BlockSpec((Cout, 1), lambda g: (0, 0)),                  # b1
                pl.BlockSpec((Cout, kernel_size * Cout), lambda g: (0, 0)), # w2
                pl.BlockSpec((Cout, 1), lambda g: (0, 0)),                  # b2
                pl.BlockSpec((Cout, Cin), lambda g: (0, 0)),                # wr
                pl.BlockSpec((Cout, 1), lambda g: (0, 0)),                  # br
            ],
            out_specs=pl.BlockSpec((1, Cout, Bt * L), lambda g: (g, 0, 0)),
            scratch_shapes=[
                pltpu.VMEM((Bt, Cin, Lp2), jnp.float32),                # xp
                pltpu.VMEM((kernel_size * Cin, Bt * Lp), jnp.float32),  # rhs1
                pltpu.VMEM((Cout, Bt * Lp), jnp.float32),               # h1pad
                pltpu.VMEM((kernel_size * Cout, Bt * L), jnp.float32),  # rhs2
            ]),
        compiler_params=pltpu.CompilerParams(
            dimension_semantics=("parallel",),
            vmem_limit_bytes=_vmem_limit_bytes()),
    )(x_ncw, w1m, params["b1"], w2m, params["b2"], wr, params["br"])

    # (nB, Cout, Bt*L) -> (B, Cout, L): trivial layout plumbing outside kernel.
    return out.reshape(nB, Cout, Bt, L).transpose(0, 2, 1, 3).reshape(B, Cout, L)


# ----------------------------------------------------------------------------
# Parameter construction (deterministic, mimics the PyTorch __init__).
# ----------------------------------------------------------------------------
def make_params(key, input_size, output_size, kernel_size):
    def xavier_normal(k, cout, cin, ksz):
        fan_in, fan_out = cin * ksz, cout * ksz
        std = math.sqrt(2.0 / (fan_in + fan_out))
        return std * jax.random.normal(k, (cout, cin, ksz), jnp.float32)

    def conv_bias(k, cout, cin, ksz):
        bound = 1.0 / math.sqrt(cin * ksz)
        return jax.random.uniform(k, (cout,), jnp.float32, -bound, bound)

    ks = jax.random.split(key, 6)
    # weight_norm: w = g * v / ||v|| with g initialized to ||v||  =>  w == v
    w1 = xavier_normal(ks[0], output_size, input_size, kernel_size)
    w2 = xavier_normal(ks[1], output_size, output_size, kernel_size)
    b1 = conv_bias(ks[3], output_size, input_size, kernel_size)
    b2 = conv_bias(ks[4], output_size, output_size, kernel_size)
    if input_size == output_size:
        # PyTorch module skips resample when shapes match -> identity residual.
        wr = jnp.eye(output_size, dtype=jnp.float32)
        br = jnp.zeros((output_size,), jnp.float32)
    else:
        wr = xavier_normal(ks[2], output_size, input_size, 1)[:, :, 0]
        br = conv_bias(ks[5], output_size, input_size, 1)

    def to_matrix(w):   # (Cout, Cin, K) -> (Cout, K*Cin), tap-major row blocks
        cout, cin, ksz = w.shape
        return jnp.transpose(w, (0, 2, 1)).reshape(cout, ksz * cin)

    return {
        "w1m": to_matrix(w1),
        "b1": b1.reshape(output_size, 1),
        "w2m": to_matrix(w2),
        "b2": b2.reshape(output_size, 1),
        "wr": wr,                               # (Cout, Cin)
        "br": br.reshape(output_size, 1),
    }


# ----------------------------------------------------------------------------
# Pure-JAX reference (independent pad + per-tap einsum path) for sanity check.
# ----------------------------------------------------------------------------
def reference_forward(x_ncw, params, *, kernel_size, dilation):
    B, Cin, L = x_ncw.shape
    Cout = params["w1m"].shape[0]
    pad_l = math.floor((kernel_size - 1) * dilation / 2)
    pad_r = math.ceil((kernel_size - 1) * dilation / 2)

    def dconv(v, wm, b):
        C = v.shape[1]
        vp = jnp.pad(v, ((0, 0), (0, 0), (pad_l, pad_r)))
        w = wm.reshape(Cout, kernel_size, C)
        acc = jnp.zeros((B, Cout, L), jnp.float32)
        for k in range(kernel_size):
            acc = acc + jnp.einsum(
                "oc,bcl->bol", w[:, k, :],
                vp[:, :, k * dilation:k * dilation + L])
        return acc + b[None, :, :]

    h1 = jax.nn.relu(dconv(x_ncw, params["w1m"], params["b1"]))
    h2 = jax.nn.relu(dconv(h1, params["w2m"], params["b2"]))
    res = jnp.einsum("oc,bcl->bol", params["wr"], x_ncw) + params["br"][None, :, :]
    return jax.nn.relu(h2 + res)


if __name__ == "__main__":
    # TCNBlock(input_size=8, output_size=16, kernel_size=3, dilation=2,
    #          dropout=0.1, stride=1)   (dropout is identity at inference)
    B, Cin, Cout, L = 8, 8, 16, 32
    K, DIL = 3, 2

    key = jax.random.PRNGKey(0)
    kx, kp = jax.random.split(key)
    x = jax.random.normal(kx, (B, Cin, L), jnp.float32)
    params = make_params(kp, Cin, Cout, K)

    ref = reference_forward(x, params, kernel_size=K, dilation=DIL)

    # f32 MXU path (exactness check)
    out_f32 = tcn_block_forward(x, params, kernel_size=K, dilation=DIL,
                                compute_dtype=jnp.float32)
    out_f32 = jax.block_until_ready(out_f32)
    assert out_f32.shape == (B, Cout, L)
    assert jnp.allclose(out_f32, ref, atol=1e-4, rtol=1e-4), "f32 mismatch vs reference"

    # default (perf) path: bf16 MXU operands / f32 accumulation,
    # weights pre-cast once so the hot path has no per-call converts.
    params_bf16 = cast_weights(params, jnp.bfloat16)
    out_bf16 = tcn_block_forward(x, params_bf16, kernel_size=K, dilation=DIL)
    out_bf16 = jax.block_until_ready(out_bf16)
    assert out_bf16.shape == (B, Cout, L)
    assert jnp.allclose(out_bf16, ref, atol=1e-1, rtol=5e-2), "bf16 mismatch vs reference"

    print("KERNEL_OK")
</pallas_src>

<mosaic_0001>
module attributes {stable_mosaic.version = 11 : i64} {
  func.func @_tcn_block_kernel(%arg0: i32, %arg1: memref<4x8x32xf32, #tpu.memory_space<vmem>>, %arg2: memref<16x24xf32, #tpu.memory_space<vmem>>, %arg3: memref<16x1xf32, #tpu.memory_space<vmem>>, %arg4: memref<16x48xf32, #tpu.memory_space<vmem>>, %arg5: memref<16x1xf32, #tpu.memory_space<vmem>>, %arg6: memref<16x8xf32, #tpu.memory_space<vmem>>, %arg7: memref<16x1xf32, #tpu.memory_space<vmem>>, %arg8: memref<1x16x128xf32, #tpu.memory_space<vmem>>, %arg9: memref<4x8x40xf32, #tpu.memory_space<vmem>>, %arg10: memref<24x144xf32, #tpu.memory_space<vmem>>, %arg11: memref<16x144xf32, #tpu.memory_space<vmem>>, %arg12: memref<48x128xf32, #tpu.memory_space<vmem>>) attributes {dimension_semantics = [#tpu.dimension_semantics<parallel>], iteration_bounds = array<i64: 2>, scalar_prefetch = 0 : i64, scratch_operands = 4 : i64, tpu.core_type = #tpu.core_type<tc>, window_params = [{transform_indices = @transform_0, window_bounds = array<i64: 4, 8, 32>}, {pipeline_mode = #tpu.pipeline_mode<synchronous>, transform_indices = @transform_1, window_bounds = array<i64: 16, 24>}, {pipeline_mode = #tpu.pipeline_mode<synchronous>, transform_indices = @transform_2, window_bounds = array<i64: 16, 1>}, {pipeline_mode = #tpu.pipeline_mode<synchronous>, transform_indices = @transform_3, window_bounds = array<i64: 16, 48>}, {pipeline_mode = #tpu.pipeline_mode<synchronous>, transform_indices = @transform_4, window_bounds = array<i64: 16, 1>}, {pipeline_mode = #tpu.pipeline_mode<synchronous>, transform_indices = @transform_5, window_bounds = array<i64: 16, 8>}, {pipeline_mode = #tpu.pipeline_mode<synchronous>, transform_indices = @transform_6, window_bounds = array<i64: 16, 1>}, {transform_indices = @transform_7, window_bounds = array<i64: 1, 16, 128>}]} {
    %cst = arith.constant 0.000000e+00 : f32
    %0 = vector.broadcast %cst : f32 to vector<4x8x4xf32>
    %c0 = arith.constant 0 : index
    %c0_0 = arith.constant 0 : index
    %c0_1 = arith.constant 0 : index
    %1 = vector.load %arg9[%c0, %c0_0, %c0_1] : memref<4x8x40xf32, #tpu.memory_space<vmem>>, vector<4x8x4xf32>
    tpu.vector_store %arg9[%c0, %c0_0, %c0_1], %0 {strides = array<i32>} : memref<4x8x40xf32, #tpu.memory_space<vmem>>, vector<4x8x4xf32>,
    %cst_2 = arith.constant 0.000000e+00 : f32
    %2 = vector.broadcast %cst_2 : f32 to vector<4x8x4xf32>
    %c0_3 = arith.constant 0 : index
    %c0_4 = arith.constant 0 : index
    %c36 = arith.constant 36 : index
    %3 = vector.load %arg9[%c0_3, %c0_4, %c36] : memref<4x8x40xf32, #tpu.memory_space<vmem>>, vector<4x8x4xf32>
    tpu.vector_store %arg9[%c0_3, %c0_4, %c36], %2 {strides = array<i32>} : memref<4x8x40xf32, #tpu.memory_space<vmem>>, vector<4x8x4xf32>,
    %c0_5 = arith.constant 0 : index
    %c0_6 = arith.constant 0 : index
    %c0_7 = arith.constant 0 : index
    %4 = vector.load %arg1[%c0_5, %c0_6, %c0_7] : memref<4x8x32xf32, #tpu.memory_space<vmem>>, vector<4x8x32xf32>
    %c0_8 = arith.constant 0 : index
    %c0_9 = arith.constant 0 : index
    %c4 = arith.constant 4 : index
    %5 = vector.load %arg9[%c0_8, %c0_9, %c4] : memref<4x8x40xf32, #tpu.memory_space<vmem>>, vector<4x8x32xf32>
    tpu.vector_store %arg9[%c0_8, %c0_9, %c4], %4 {strides = array<i32>} : memref<4x8x40xf32, #tpu.memory_space<vmem>>, vector<4x8x32xf32>,
    %c0_10 = arith.constant 0 : index
    %c0_11 = arith.constant 0 : index
    %c0_12 = arith.constant 0 : index
    %6 = vector.load %arg9[%c0_10, %c0_11, %c0_12] : memref<4x8x40xf32, #tpu.memory_space<vmem>>, vector<1x8x36xf32>
    %7 = vector.shape_cast %6 : vector<1x8x36xf32> to vector<8x36xf32>
    %c0_13 = arith.constant 0 : index
    %c0_14 = arith.constant 0 : index
    %8 = vector.load %arg10[%c0_13, %c0_14] : memref<24x144xf32, #tpu.memory_space<vmem>>, vector<8x36xf32>
    tpu.vector_store %arg10[%c0_13, %c0_14], %7 {strides = array<i32>} : memref<24x144xf32, #tpu.memory_space<vmem>>, vector<8x36xf32>,
    %c1 = arith.constant 1 : index
    %c0_15 = arith.constant 0 : index
    %c0_16 = arith.constant 0 : index
    %9 = vector.load %arg9[%c1, %c0_15, %c0_16] : memref<4x8x40xf32, #tpu.memory_space<vmem>>, vector<1x8x36xf32>
    %10 = vector.shape_cast %9 : vector<1x8x36xf32> to vector<8x36xf32>
    %c0_17 = arith.constant 0 : index
    %c36_18 = arith.constant 36 : index
    %11 = vector.load %arg10[%c0_17, %c36_18] : memref<24x144xf32, #tpu.memory_space<vmem>>, vector<8x36xf32>
    tpu.vector_store %arg10[%c0_17, %c36_18], %10 {strides = array<i32>} : memref<24x144xf32, #tpu.memory_space<vmem>>, vector<8x36xf32>,
    %c2 = arith.constant 2 : index
    %c0_19 = arith.constant 0 : index
    %c0_20 = arith.constant 0 : index
    %12 = vector.load %arg9[%c2, %c0_19, %c0_20] : memref<4x8x40xf32, #tpu.memory_space<vmem>>, vector<1x8x36xf32>
    %13 = vector.shape_cast %12 : vector<1x8x36xf32> to vector<8x36xf32>
    %c0_21 = arith.constant 0 : index
    %c72 = arith.constant 72 : index
    %14 = vector.load %arg10[%c0_21, %c72] : memref<24x144xf32, #tpu.memory_space<vmem>>, vector<8x36xf32>
    tpu.vector_store %arg10[%c0_21, %c72], %13 {strides = array<i32>} : memref<24x144xf32, #tpu.memory_space<vmem>>, vector<8x36xf32>,
    %c3 = arith.constant 3 : index
    %c0_22 = arith.constant 0 : index
    %c0_23 = arith.constant 0 : index
    %15 = vector.load %arg9[%c3, %c0_22, %c0_23] : memref<4x8x40xf32, #tpu.memory_space<vmem>>, vector<1x8x36xf32>
    %16 = vector.shape_cast %15 : vector<1x8x36xf32> to vector<8x36xf32>
    %c0_24 = arith.constant 0 : index
    %c108 = arith.constant 108 : index
    %17 = vector.load %arg10[%c0_24, %c108] : memref<24x144xf32, #tpu.memory_space<vmem>>, vector<8x36xf32>
    tpu.vector_store %arg10[%c0_24, %c108], %16 {strides = array<i32>} : memref<24x144xf32, #tpu.memory_space<vmem>>, vector<8x36xf32>,
    %c0_25 = arith.constant 0 : index
    %c0_26 = arith.constant 0 : index
    %c2_27 = arith.constant 2 : index
    %18 = vector.load %arg9[%c0_25, %c0_26, %c2_27] : memref<4x8x40xf32, #tpu.memory_space<vmem>>, vector<1x8x36xf32>
    %19 = vector.shape_cast %18 : vector<1x8x36xf32> to vector<8x36xf32>
    %c8 = arith.constant 8 : index
    %c0_28 = arith.constant 0 : index
    %20 = vector.load %arg10[%c8, %c0_28] : memref<24x144xf32, #tpu.memory_space<vmem>>, vector<8x36xf32>
    tpu.vector_store %arg10[%c8, %c0_28], %19 {strides = array<i32>} : memref<24x144xf32, #tpu.memory_space<vmem>>, vector<8x36xf32>,
    %c1_29 = arith.constant 1 : index
    %c0_30 = arith.constant 0 : index
    %c2_31 = arith.constant 2 : index
    %21 = vector.load %arg9[%c1_29, %c0_30, %c2_31] : memref<4x8x40xf32, #tpu.memory_space<vmem>>, vector<1x8x36xf32>
    %22 = vector.shape_cast %21 : vector<1x8x36xf32> to vector<8x36xf32>
    %c8_32 = arith.constant 8 : index
    %c36_33 = arith.constant 36 : index
    %23 = vector.load %arg10[%c8_32, %c36_33] : memref<24x144xf32, #tpu.memory_space<vmem>>, vector<8x36xf32>
    tpu.vector_store %arg10[%c8_32, %c36_33], %22 {strides = array<i32>} : memref<24x144xf32, #tpu.memory_space<vmem>>, vector<8x36xf32>,
    %c2_34 = arith.constant 2 : index
    %c0_35 = arith.constant 0 : index
    %c2_36 = arith.constant 2 : index
    %24 = vector.load %arg9[%c2_34, %c0_35, %c2_36] : memref<4x8x40xf32, #tpu.memory_space<vmem>>, vector<1x8x36xf32>
    %25 = vector.shape_cast %24 : vector<1x8x36xf32> to vector<8x36xf32>
    %c8_37 = arith.constant 8 : index
    %c72_38 = arith.constant 72 : index
    %26 = vector.load %arg10[%c8_37, %c72_38] : memref<24x144xf32, #tpu.memory_space<vmem>>, vector<8x36xf32>
    tpu.vector_store %arg10[%c8_37, %c72_38], %25 {strides = array<i32>} : memref<24x144xf32, #tpu.memory_space<vmem>>, vector<8x36xf32>,
    %c3_39 = arith.constant 3 : index
    %c0_40 = arith.constant 0 : index
    %c2_41 = arith.constant 2 : index
    %27 = vector.load %arg9[%c3_39, %c0_40, %c2_41] : memref<4x8x40xf32, #tpu.memory_space<vmem>>, vector<1x8x36xf32>
    %28 = vector.shape_cast %27 : vector<1x8x36xf32> to vector<8x36xf32>
    %c8_42 = arith.constant 8 : index
    %c108_43 = arith.constant 108 : index
    %29 = vector.load %arg10[%c8_42, %c108_43] : memref<24x144xf32, #tpu.memory_space<vmem>>, vector<8x36xf32>
    tpu.vector_store %arg10[%c8_42, %c108_43], %28 {strides = array<i32>} : memref<24x144xf32, #tpu.memory_space<vmem>>, vector<8x36xf32>,
    %c0_44 = arith.constant 0 : index
    %c0_45 = arith.constant 0 : index
    %c4_46 = arith.constant 4 : index
    %30 = vector.load %arg9[%c0_44, %c0_45, %c4_46] : memref<4x8x40xf32, #tpu.memory_space<vmem>>, vector<1x8x36xf32>
    %31 = vector.shape_cast %30 : vector<1x8x36xf32> to vector<8x36xf32>
    %c16 = arith.constant 16 : index
    %c0_47 = arith.constant 0 : index
    %32 = vector.load %arg10[%c16, %c0_47] : memref<24x144xf32, #tpu.memory_space<vmem>>, vector<8x36xf32>
    tpu.vector_store %arg10[%c16, %c0_47], %31 {strides = array<i32>} : memref<24x144xf32, #tpu.memory_space<vmem>>, vector<8x36xf32>,
    %c1_48 = arith.constant 1 : index
    %c0_49 = arith.constant 0 : index
    %c4_50 = arith.constant 4 : index
    %33 = vector.load %arg9[%c1_48, %c0_49, %c4_50] : memref<4x8x40xf32, #tpu.memory_space<vmem>>, vector<1x8x36xf32>
    %34 = vector.shape_cast %33 : vector<1x8x36xf32> to vector<8x36xf32>
    %c16_51 = arith.constant 16 : index
    %c36_52 = arith.constant 36 : index
    %35 = vector.load %arg10[%c16_51, %c36_52] : memref<24x144xf32, #tpu.memory_space<vmem>>, vector<8x36xf32>
    tpu.vector_store %arg10[%c16_51, %c36_52], %34 {strides = array<i32>} : memref<24x144xf32, #tpu.memory_space<vmem>>, vector<8x36xf32>,
    %c2_53 = arith.constant 2 : index
    %c0_54 = arith.constant 0 : index
    %c4_55 = arith.constant 4 : index
    %36 = vector.load %arg9[%c2_53, %c0_54, %c4_55] : memref<4x8x40xf32, #tpu.memory_space<vmem>>, vector<1x8x36xf32>
    %37 = vector.shape_cast %36 : vector<1x8x36xf32> to vector<8x36xf32>
    %c16_56 = arith.constant 16 : index
    %c72_57 = arith.constant 72 : index
    %38 = vector.load %arg10[%c16_56, %c72_57] : memref<24x144xf32, #tpu.memory_space<vmem>>, vector<8x36xf32>
    tpu.vector_store %arg10[%c16_56, %c72_57], %37 {strides = array<i32>} : memref<24x144xf32, #tpu.memory_space<vmem>>, vector<8x36xf32>,
    %c3_58 = arith.constant 3 : index
    %c0_59 = arith.constant 0 : index
    %c4_60 = arith.constant 4 : index
    %39 = vector.load %arg9[%c3_58, %c0_59, %c4_60] : memref<4x8x40xf32, #tpu.memory_space<vmem>>, vector<1x8x36xf32>
    %40 = vector.shape_cast %39 : vector<1x8x36xf32> to vector<8x36xf32>
    %c16_61 = arith.constant 16 : index
    %c108_62 = arith.constant 108 : index
    %41 = vector.load %arg10[%c16_61, %c108_62] : memref<24x144xf32, #tpu.memory_space<vmem>>, vector<8x36xf32>
    tpu.vector_store %arg10[%c16_61, %c108_62], %40 {strides = array<i32>} : memref<24x144xf32, #tpu.memory_space<vmem>>, vector<8x36xf32>,
    %c0_63 = arith.constant 0 : index
    %c0_64 = arith.constant 0 : index
    %42 = vector.load %arg2[%c0_63, %c0_64] : memref<16x24xf32, #tpu.memory_space<vmem>>, vector<16x24xf32>
    %c0_65 = arith.constant 0 : index
    %c0_66 = arith.constant 0 : index
    %43 = vector.load %arg10[%c0_65, %c0_66] : memref<24x144xf32, #tpu.memory_space<vmem>>, vector<24x144xf32>
    %cst_67 = arith.constant dense<0.000000e+00> : vector<16x144xf32>
    %44 = tpu.matmul %42, %43, %cst_67 {dimension_numbers = #tpu.dot_dimension_numbers<[1], [0], [0], [1], [0, 0, 1, 1], [], []>} : vector<16x24xf32>, vector<24x144xf32>, vector<16x144xf32> -> vector<16x144xf32>
    %c0_68 = arith.constant 0 : index
    %c0_69 = arith.constant 0 : index
    %45 = vector.load %arg3[%c0_68, %c0_69] : memref<16x1xf32, #tpu.memory_space<vmem>>, vector<16x1xf32>
    %46 = vector.broadcast %45 : vector<16x1xf32> to vector<16x144xf32>
    %47 = arith.addf %44, %46 : vector<16x144xf32>
    %cst_70 = arith.constant 0.000000e+00 : f32
    %48 = vector.broadcast %cst_70 : f32 to vector<16x144xf32>
    %49 = arith.maximumf %47, %48 : vector<16x144xf32>
    %c0_71 = arith.constant 0 : index
    %c0_72 = arith.constant 0 : index
    %50 = vector.load %arg11[%c0_71, %c0_72] : memref<16x144xf32, #tpu.memory_space<vmem>>, vector<16x144xf32>
    tpu.vector_store %arg11[%c0_71, %c0_72], %49 {strides = array<i32>} : memref<16x144xf32, #tpu.memory_space<vmem>>, vector<16x144xf32>,
    %cst_73 = arith.constant 0.000000e+00 : f32
    %51 = vector.broadcast %cst_73 : f32 to vector<16x2xf32>
    %c0_74 = arith.constant 0 : index
    %c0_75 = arith.constant 0 : index
    %52 = vector.load %arg11[%c0_74, %c0_75] : memref<16x144xf32, #tpu.memory_space<vmem>>, vector<16x2xf32>
    tpu.vector_store %arg11[%c0_74, %c0_75], %51 {strides = array<i32>} : memref<16x144xf32, #tpu.memory_space<vmem>>, vector<16x2xf32>,
    %cst_76 = arith.constant 0.000000e+00 : f32
    %53 = vector.broadcast %cst_76 : f32 to vector<16x2xf32>
    %c0_77 = arith.constant 0 : index
    %c34 = arith.constant 34 : index
    %54 = vector.load %arg11[%c0_77, %c34] : memref<16x144xf32, #tpu.memory_space<vmem>>, vector<16x2xf32>
    tpu.vector_store %arg11[%c0_77, %c34], %53 {strides = array<i32>} : memref<16x144xf32, #tpu.memory_space<vmem>>, vector<16x2xf32>,
    %cst_78 = arith.constant 0.000000e+00 : f32
    %55 = vector.broadcast %cst_78 : f32 to vector<16x2xf32>
    %c0_79 = arith.constant 0 : index
    %c36_80 = arith.constant 36 : index
    %56 = vector.load %arg11[%c0_79, %c36_80] : memref<16x144xf32, #tpu.memory_space<vmem>>, vector<16x2xf32>
    tpu.vector_store %arg11[%c0_79, %c36_80], %55 {strides = array<i32>} : memref<16x144xf32, #tpu.memory_space<vmem>>, vector<16x2xf32>,
    %cst_81 = arith.constant 0.000000e+00 : f32
    %57 = vector.broadcast %cst_81 : f32 to vector<16x2xf32>
    %c0_82 = arith.constant 0 : index
    %c70 = arith.constant 70 : index
    %58 = vector.load %arg11[%c0_82, %c70] : memref<16x144xf32, #tpu.memory_space<vmem>>, vector<16x2xf32>
    tpu.vector_store %arg11[%c0_82, %c70], %57 {strides = array<i32>} : memref<16x144xf32, #tpu.memory_space<vmem>>, vector<16x2xf32>,
    %cst_83 = arith.constant 0.000000e+00 : f32
    %59 = vector.broadcast %cst_83 : f32 to vector<16x2xf32>
    %c0_84 = arith.constant 0 : index
    %c72_85 = arith.constant 72 : index
    %60 = vector.load %arg11[%c0_84, %c72_85] : memref<16x144xf32, #tpu.memory_space<vmem>>, vector<16x2xf32>
    tpu.vector_store %arg11[%c0_84, %c72_85], %59 {strides = array<i32>} : memref<16x144xf32, #tpu.memory_space<vmem>>, vector<16x2xf32>,
    %cst_86 = arith.constant 0.000000e+00 : f32
    %61 = vector.broadcast %cst_86 : f32 to vector<16x2xf32>
    %c0_87 = arith.constant 0 : index
    %c106 = arith.constant 106 : index
    %62 = vector.load %arg11[%c0_87, %c106] : memref<16x144xf32, #tpu.memory_space<vmem>>, vector<16x2xf32>
    tpu.vector_store %arg11[%c0_87, %c106], %61 {strides = array<i32>} : memref<16x144xf32, #tpu.memory_space<vmem>>, vector<16x2xf32>,
    %cst_88 = arith.constant 0.000000e+00 : f32
    %63 = vector.broadcast %cst_88 : f32 to vector<16x2xf32>
    %c0_89 = arith.constant 0 : index
    %c108_90 = arith.constant 108 : index
    %64 = vector.load %arg11[%c0_89, %c108_90] : memref<16x144xf32, #tpu.memory_space<vmem>>, vector<16x2xf32>
    tpu.vector_store %arg11[%c0_89, %c108_90], %63 {strides = array<i32>} : memref<16x144xf32, #tpu.memory_space<vmem>>, vector<16x2xf32>,
    %cst_91 = arith.constant 0.000000e+00 : f32
    %65 = vector.broadcast %cst_91 : f32 to vector<16x2xf32>
    %c0_92 = arith.constant 0 : index
    %c142 = arith.constant 142 : index
    %66 = vector.load %arg11[%c0_92, %c142] : memref<16x144xf32, #tpu.memory_space<vmem>>, vector<16x2xf32>
    tpu.vector_store %arg11[%c0_92, %c142], %65 {strides = array<i32>} : memref<16x144xf32, #tpu.memory_space<vmem>>, vector<16x2xf32>,
    %c0_93 = arith.constant 0 : index
    %c0_94 = arith.constant 0 : index
    %67 = vector.load %arg11[%c0_93, %c0_94] : memref<16x144xf32, #tpu.memory_space<vmem>>, vector<16x32xf32>
    %c0_95 = arith.constant 0 : index
    %c0_96 = arith.constant 0 : index
    %68 = vector.load %arg12[%c0_95, %c0_96] : memref<48x128xf32, #tpu.memory_space<vmem>>, vector<16x32xf32>
    tpu.vector_store %arg12[%c0_95, %c0_96], %67 {strides = array<i32>} : memref<48x128xf32, #tpu.memory_space<vmem>>, vector<16x32xf32>,
    %c0_97 = arith.constant 0 : index
    %c36_98 = arith.constant 36 : index
    %69 = vector.load %arg11[%c0_97, %c36_98] : memref<16x144xf32, #tpu.memory_space<vmem>>, vector<16x32xf32>
    %c0_99 = arith.constant 0 : index
    %c32 = arith.constant 32 : index
    %70 = vector.load %arg12[%c0_99, %c32] : memref<48x128xf32, #tpu.memory_space<vmem>>, vector<16x32xf32>
    tpu.vector_store %arg12[%c0_99, %c32], %69 {strides = array<i32>} : memref<48x128xf32, #tpu.memory_space<vmem>>, vector<16x32xf32>,
    %c0_100 = arith.constant 0 : index
    %c72_101 = arith.constant 72 : index
    %71 = vector.load %arg11[%c0_100, %c72_101] : memref<16x144xf32, #tpu.memory_space<vmem>>, vector<16x32xf32>
    %c0_102 = arith.constant 0 : index
    %c64 = arith.constant 64 : index
    %72 = vector.load %arg12[%c0_102, %c64] : memref<48x128xf32, #tpu.memory_space<vmem>>, vector<16x32xf32>
    tpu.vector_store %arg12[%c0_102, %c64], %71 {strides = array<i32>} : memref<48x128xf32, #tpu.memory_space<vmem>>, vector<16x32xf32>,
    %c0_103 = arith.constant 0 : index
    %c108_104 = arith.constant 108 : index
    %73 = vector.load %arg11[%c0_103, %c108_104] : memref<16x144xf32, #tpu.memory_space<vmem>>, vector<16x32xf32>
    %c0_105 = arith.constant 0 : index
    %c96 = arith.constant 96 : index
    %74 = vector.load %arg12[%c0_105, %c96] : memref<48x128xf32, #tpu.memory_space<vmem>>, vector<16x32xf32>
    tpu.vector_store %arg12[%c0_105, %c96], %73 {strides = array<i32>} : memref<48x128xf32, #tpu.memory_space<vmem>>, vector<16x32xf32>,
    %c0_106 = arith.constant 0 : index
    %c2_107 = arith.constant 2 : index
    %75 = vector.load %arg11[%c0_106, %c2_107] : memref<16x144xf32, #tpu.memory_space<vmem>>, vector<16x32xf32>
    %c16_108 = arith.constant 16 : index
    %c0_109 = arith.constant 0 : index
    %76 = vector.load %arg12[%c16_108, %c0_109] : memref<48x128xf32, #tpu.memory_space<vmem>>, vector<16x32xf32>
    tpu.vector_store %arg12[%c16_108, %c0_109], %75 {strides = array<i32>} : memref<48x128xf32, #tpu.memory_space<vmem>>, vector<16x32xf32>,
    %c0_110 = arith.constant 0 : index
    %c38 = arith.constant 38 : index
    %77 = vector.load %arg11[%c0_110, %c38] : memref<16x144xf32, #tpu.memory_space<vmem>>, vector<16x32xf32>
    %c16_111 = arith.constant 16 : index
    %c32_112 = arith.constant 32 : index
    %78 = vector.load %arg12[%c16_111, %c32_112] : memref<48x128xf32, #tpu.memory_space<vmem>>, vector<16x32xf32>
    tpu.vector_store %arg12[%c16_111, %c32_112], %77 {strides = array<i32>} : memref<48x128xf32, #tpu.memory_space<vmem>>, vector<16x32xf32>,
    %c0_113 = arith.constant 0 : index
    %c74 = arith.constant 74 : index
    %79 = vector.load %arg11[%c0_113, %c74] : memref<16x144xf32, #tpu.memory_space<vmem>>, vector<16x32xf32>
    %c16_114 = arith.constant 16 : index
    %c64_115 = arith.constant 64 : index
    %80 = vector.load %arg12[%c16_114, %c64_115] : memref<48x128xf32, #tpu.memory_space<vmem>>, vector<16x32xf32>
    tpu.vector_store %arg12[%c16_114, %c64_115], %79 {strides = array<i32>} : memref<48x128xf32, #tpu.memory_space<vmem>>, vector<16x32xf32>,
    %c0_116 = arith.constant 0 : index
    %c110 = arith.constant 110 : index
    %81 = vector.load %arg11[%c0_116, %c110] : memref<16x144xf32, #tpu.memory_space<vmem>>, vector<16x32xf32>
    %c16_117 = arith.constant 16 : index
    %c96_118 = arith.constant 96 : index
    %82 = vector.load %arg12[%c16_117, %c96_118] : memref<48x128xf32, #tpu.memory_space<vmem>>, vector<16x32xf32>
    tpu.vector_store %arg12[%c16_117, %c96_118], %81 {strides = array<i32>} : memref<48x128xf32, #tpu.memory_space<vmem>>, vector<16x32xf32>,
    %c0_119 = arith.constant 0 : index
    %c4_120 = arith.constant 4 : index
    %83 = vector.load %arg11[%c0_119, %c4_120] : memref<16x144xf32, #tpu.memory_space<vmem>>, vector<16x32xf32>
    %c32_121 = arith.constant 32 : index
    %c0_122 = arith.constant 0 : index
    %84 = vector.load %arg12[%c32_121, %c0_122] : memref<48x128xf32, #tpu.memory_space<vmem>>, vector<16x32xf32>
    tpu.vector_store %arg12[%c32_121, %c0_122], %83 {strides = array<i32>} : memref<48x128xf32, #tpu.memory_space<vmem>>, vector<16x32xf32>,
    %c0_123 = arith.constant 0 : index
    %c40 = arith.constant 40 : index
    %85 = vector.load %arg11[%c0_123, %c40] : memref<16x144xf32, #tpu.memory_space<vmem>>, vector<16x32xf32>
    %c32_124 = arith.constant 32 : index
    %c32_125 = arith.constant 32 : index
    %86 = vector.load %arg12[%c32_124, %c32_125] : memref<48x128xf32, #tpu.memory_space<vmem>>, vector<16x32xf32>
    tpu.vector_store %arg12[%c32_124, %c32_125], %85 {strides = array<i32>} : memref<48x128xf32, #tpu.memory_space<vmem>>, vector<16x32xf32>,
    %c0_126 = arith.constant 0 : index
    %c76 = arith.constant 76 : index
    %87 = vector.load %arg11[%c0_126, %c76] : memref<16x144xf32, #tpu.memory_space<vmem>>, vector<16x32xf32>
    %c32_127 = arith.constant 32 : index
    %c64_128 = arith.constant 64 : index
    %88 = vector.load %arg12[%c32_127, %c64_128] : memref<48x128xf32, #tpu.memory_space<vmem>>, vector<16x32xf32>
    tpu.vector_store %arg12[%c32_127, %c64_128], %87 {strides = array<i32>} : memref<48x128xf32, #tpu.memory_space<vmem>>, vector<16x32xf32>,
    %c0_129 = arith.constant 0 : index
    %c112 = arith.constant 112 : index
    %89 = vector.load %arg11[%c0_129, %c112] : memref<16x144xf32, #tpu.memory_space<vmem>>, vector<16x32xf32>
    %c32_130 = arith.constant 32 : index
    %c96_131 = arith.constant 96 : index
    %90 = vector.load %arg12[%c32_130, %c96_131] : memref<48x128xf32, #tpu.memory_space<vmem>>, vector<16x32xf32>
    tpu.vector_store %arg12[%c32_130, %c96_131], %89 {strides = array<i32>} : memref<48x128xf32, #tpu.memory_space<vmem>>, vector<16x32xf32>,
    %c0_132 = arith.constant 0 : index
    %c0_133 = arith.constant 0 : index
    %91 = vector.load %arg4[%c0_132, %c0_133] : memref<16x48xf32, #tpu.memory_space<vmem>>, vector<16x48xf32>
    %c0_134 = arith.constant 0 : index
    %c0_135 = arith.constant 0 : index
    %92 = vector.load %arg12[%c0_134, %c0_135] : memref<48x128xf32, #tpu.memory_space<vmem>>, vector<48x128xf32>
    %cst_136 = arith.constant dense<0.000000e+00> : vector<16x128xf32>
    %93 = tpu.matmul %91, %92, %cst_136 {dimension_numbers = #tpu.dot_dimension_numbers<[1], [0], [0], [1], [0, 0, 1, 1], [], []>} : vector<16x48xf32>, vector<48x128xf32>, vector<16x128xf32> -> vector<16x128xf32>
    %c0_137 = arith.constant 0 : index
    %c0_138 = arith.constant 0 : index
    %94 = vector.load %arg5[%c0_137, %c0_138] : memref<16x1xf32, #tpu.memory_space<vmem>>, vector<16x1xf32>
    %95 = vector.broadcast %94 : vector<16x1xf32> to vector<16x128xf32>
    %96 = arith.addf %93, %95 : vector<16x128xf32>
    %cst_139 = arith.constant 0.000000e+00 : f32
    %97 = vector.broadcast %cst_139 : f32 to vector<16x128xf32>
    %98 = arith.maximumf %96, %97 : vector<16x128xf32>
    %c0_140 = arith.constant 0 : index
    %c0_141 = arith.constant 0 : index
    %c0_142 = arith.constant 0 : index
    %99 = vector.load %arg1[%c0_140, %c0_141, %c0_142] : memref<4x8x32xf32, #tpu.memory_space<vmem>>, vector<1x8x32xf32>
    %100 = vector.shape_cast %99 : vector<1x8x32xf32> to vector<8x32xf32>
    %c1_143 = arith.constant 1 : index
    %c0_144 = arith.constant 0 : index
    %c0_145 = arith.constant 0 : index
    %101 = vector.load %arg1[%c1_143, %c0_144, %c0_145] : memref<4x8x32xf32, #tpu.memory_space<vmem>>, vector<1x8x32xf32>
    %102 = vector.shape_cast %101 : vector<1x8x32xf32> to vector<8x32xf32>
    %c2_146 = arith.constant 2 : index
    %c0_147 = arith.constant 0 : index
    %c0_148 = arith.constant 0 : index
    %103 = vector.load %arg1[%c2_146, %c0_147, %c0_148] : memref<4x8x32xf32, #tpu.memory_space<vmem>>, vector<1x8x32xf32>
    %104 = vector.shape_cast %103 : vector<1x8x32xf32> to vector<8x32xf32>
    %c3_149 = arith.constant 3 : index
    %c0_150 = arith.constant 0 : index
    %c0_151 = arith.constant 0 : index
    %105 = vector.load %arg1[%c3_149, %c0_150, %c0_151] : memref<4x8x32xf32, #tpu.memory_space<vmem>>, vector<1x8x32xf32>
    %106 = vector.shape_cast %105 : vector<1x8x32xf32> to vector<8x32xf32>
    %107 = tpu.concatenate %100, %102, %104, %106 in 1 : vector<8x32xf32>, vector<8x32xf32>, vector<8x32xf32>, vector<8x32xf32> -> vector<8x128xf32>
    %c0_152 = arith.constant 0 : index
    %c0_153 = arith.constant 0 : index
    %108 = vector.load %arg6[%c0_152, %c0_153] : memref<16x8xf32, #tpu.memory_space<vmem>>, vector<16x8xf32>
    %cst_154 = arith.constant dense<0.000000e+00> : vector<16x128xf32>
    %109 = tpu.matmul %108, %107, %cst_154 {dimension_numbers = #tpu.dot_dimension_numbers<[1], [0], [0], [1], [0, 0, 1, 1], [], []>} : vector<16x8xf32>, vector<8x128xf32>, vector<16x128xf32> -> vector<16x128xf32>
    %c0_155 = arith.constant 0 : index
    %c0_156 = arith.constant 0 : index
    %110 = vector.load %arg7[%c0_155, %c0_156] : memref<16x1xf32, #tpu.memory_space<vmem>>, vector<16x1xf32>
    %111 = vector.broadcast %110 : vector<16x1xf32> to vector<16x128xf32>
    %112 = arith.addf %109, %111 : vector<16x128xf32>
    %113 = arith.addf %98, %112 : vector<16x128xf32>
    %cst_157 = arith.constant 0.000000e+00 : f32
    %114 = vector.broadcast %cst_157 : f32 to vector<16x128xf32>
    %115 = arith.maximumf %113, %114 : vector<16x128xf32>
    %c0_158 = arith.constant 0 : index
    %c0_159 = arith.constant 0 : index
    %c0_160 = arith.constant 0 : index
    %116 = vector.load %arg8[%c0_158, %c0_159, %c0_160] : memref<1x16x128xf32, #tpu.memory_space<vmem>>, vector<1x16x128xf32>
    %117 = vector.shape_cast %116 : vector<1x16x128xf32> to vector<16x128xf32>
    %118 = vector.shape_cast %115 : vector<16x128xf32> to vector<1x16x128xf32>
    tpu.vector_store %arg8[%c0_158, %c0_159, %c0_160], %118 {strides = array<i32>} : memref<1x16x128xf32, #tpu.memory_space<vmem>>, vector<1x16x128xf32>,
    return
  }
  func.func @transform_0(%arg0: i32) -> (i32, i32, i32) {
    %c0_i32 = arith.constant 0 : i32
    %c0_i32_0 = arith.constant 0 : i32
    %c0_i32_1 = arith.constant 0 : i32
    return %arg0, %c0_i32, %c0_i32_0 : i32, i32, i32
  }
  func.func @transform_1(%arg0: i32) -> (i32, i32) {
    %c0_i32 = arith.constant 0 : i32
    %c0_i32_0 = arith.constant 0 : i32
    %c0_i32_1 = arith.constant 0 : i32
    return %c0_i32, %c0_i32_0 : i32, i32
  }
  func.func @transform_2(%arg0: i32) -> (i32, i32) {
    %c0_i32 = arith.constant 0 : i32
    %c0_i32_0 = arith.constant 0 : i32
    %c0_i32_1 = arith.constant 0 : i32
    return %c0_i32, %c0_i32_0 : i32, i32
  }
  func.func @transform_3(%arg0: i32) -> (i32, i32) {
    %c0_i32 = arith.constant 0 : i32
    %c0_i32_0 = arith.constant 0 : i32
    %c0_i32_1 = arith.constant 0 : i32
    return %c0_i32, %c0_i32_0 : i32, i32
  }
  func.func @transform_4(%arg0: i32) -> (i32, i32) {
    %c0_i32 = arith.constant 0 : i32
    %c0_i32_0 = arith.constant 0 : i32
    %c0_i32_1 = arith.constant 0 : i32
    return %c0_i32, %c0_i32_0 : i32, i32
  }
  func.func @transform_5(%arg0: i32) -> (i32, i32) {
    %c0_i32 = arith.constant 0 : i32
    %c0_i32_0 = arith.constant 0 : i32
    %c0_i32_1 = arith.constant 0 : i32
    return %c0_i32, %c0_i32_0 : i32, i32
  }
  func.func @transform_6(%arg0: i32) -> (i32, i32) {
    %c0_i32 = arith.constant 0 : i32
    %c0_i32_0 = arith.constant 0 : i32
    %c0_i32_1 = arith.constant 0 : i32
    return %c0_i32, %c0_i32_0 : i32, i32
  }
  func.func @transform_7(%arg0: i32) -> (i32, i32, i32) {
    %c0_i32 = arith.constant 0 : i32
    %c0_i32_0 = arith.constant 0 : i32
    %c0_i32_1 = arith.constant 0 : i32
    return %arg0, %c0_i32, %c0_i32_0 : i32, i32, i32
  }
}

</mosaic_0001>

<bundles_post_ra>
// kernel: tpu_custom_call.1
= control target key start
LH: loop header
LB: loop body
LE: loop exit
PB: predicated region body
PF: predicated region fallthrough
CT: control target
= control target key end

     0   :  { %12 = vsyncpa [#allocation7], 0  ;;  %s1593_s0 = inlined_call_operand.vmem [shape: f32[8,8,32], index: 0, kind: input, shape index: {}]   ;;  %s1594_s1 = inlined_call_operand.hbm [shape: f32[16,24], index: 1, kind: input, shape index: {}]   ;;  %s1595_s2 = inlined_call_operand.vmem [shape: f32[16,1], index: 2, kind: input, shape index: {}]   ;;  %s1596_s3 = inlined_call_operand.vmem [shape: f32[16,48], index: 3, kind: input, shape index: {}]   ;;  %s1597_s4 = inlined_call_operand.vmem [shape: f32[16,1], index: 4, kind: input, shape index: {}]   ;;  %s1598_s5 = inlined_call_operand.vmem [shape: f32[16,8], index: 5, kind: input, shape index: {}]   ;;  %s1599_s6 = inlined_call_operand.vmem [shape: f32[16,1], index: 6, kind: input, shape index: {}]   ;;  %s1600_s7 = inlined_call_operand.hbm [shape: f32[2,16,128], index: 7, kind: output, shape index: {}]  }
   0x1   :  { %13 = vsyncpa [#allocation8], 0 }
   0x2   :  { %15 = vsyncpa [#allocation8 + $0x1], 0  ;;  %s1328_s24 = smov 0   ;;  %s1330_s25 = smov 0  }
   0x3   :  { %s1332_s26 = smov 0   ;;  %s1334_s27 = smov 0  }
   0x4 LB: > { %s1349_s28 = sadd.s32 4294967295, %s1258_s27   ;;  %s1035_s29 = sadd.s32 4294967294, %s1258_s27   ;;  %s1258_s27 = sphi %s1334_s27, %s1608_s27   ;;  %s1254_s26 = sphi %s1332_s26, %s1607_s26   ;;  %s1250_s25 = sphi %s1330_s25, %s1606_s25   ;;  %s1246_s24 = sphi %s1328_s24, %s1605_s24  }
   0x5   : > { %s1353_s30 = sadd.s32 1, %s1258_s27   ;;  %s180_s8 = sadd.s32 1, %s1254_s26 }
   0x6   : > { %s177_s9 = ssub.s32 %s1258_s27, %s1353_s30  ;;  %p190_p0 = scmp.ne.s32.totalorder %s1254_s26, %s1250_s25 }
   0x7   : > { %p178_p1 = scmp.eq.s32.totalorder %s177_s9, 0  ;;  %p191_p2 = scmp.eq.s32.totalorder %s1349_s28, 1 }
   0x8   : > { %p196_p3 = scmp.ne.s32.totalorder %s1250_s25, %s1246_s24  ;;  %p197_p4 = scmp.eq.s32.totalorder %s1035_s29, 1 }
   0x9   : > { %s1364_s10 = scalar_select %p178_p1, %s1254_s26, %s180_s8  }
   0xa   : > { %p1366_p5 = por %p191_p2, %p190_p0  ;;  %p1370_p6 = por %p197_p4, %p196_p3 }
   0xb   : > { %p1036_p7 = scmp.ge.s32.totalorder %s1258_s27, 1  ;;  %p204_p8 = scmp.lt.s32.totalorder %s1258_s27, 3 }
   0xc   : > { %s1602_s12 = scalar_select %p1370_p6, 1, 0 }
   0xd   : > { %p1104_p9 = scmp.eq.s32.totalorder %s1349_s28, 0  ;;  %p1377_p10 = pnand %p1036_p7, %p204_p8 }
   0xe   : > { %s1260_s14 = smov [#allocation6]  }
   0xf   : > { %s216_s15 = sshll.u32 %s1260_s14, 4  ;;  %p1096_p11 = pneg %p1377_p10  ;;  %s217_s15 = int_to_ptr.vmem [resolvable:$true] %s216_s15 }
  0x10   : > { %s1179_s16 = scalar_lea.vmem %s217_s15, 256  ;;  %p1187_p3 = scmp.lt.s32.totalorder %s217_s15, %s217_s15 }
  0x11   : > { %p1097_p12 = pnand %p1104_p9, %p1096_p11  ;;  %p1180_p0 = scmp.ne.s32.totalorder %s217_s15, %s1179_s16 }
  0x12   : > { %p1188_p4 = scmp.lt.s32.totalorder %s1179_s16, %s1179_s16 }
  0x13   : > { %p1170_p13 = pneg %p1097_p12 }
  0x14   : > { %p1189_p6 = por %p1188_p4, %p1187_p3 }
  0x15   : > { %p1182_p1 = pnand %p1180_p0, %p1170_p13 }
  0x17   : > { %p1183_p2 = pneg %p1182_p1 }
  0x19   : > { %p1190_p7 = pnand %p1189_p6, %p1183_p2 }
  0x1b   : > { %1193 = shalt.err (!%p1190_p7)
}
  0x1c   : > { %s1261_s17 = smov 128   ;;  %s1262_s18 = smov 8  }
  0x1d   : > { %1099 = dma.hbm_to_vmem [thread:$0]  (!%p1097_p12), %s1594_s1, 256, %s217_s15, [#allocation7], %s1261_s17, %s1261_s17, %s1262_s18  }
  0x1e   : > { %256 = sbr.rel (%p1377_p10) target bundleno = 926 (0x39e), region = 48 }
  0x23   : > { %1237 = dma.done.wait (%p1104_p9), [#allocation7], 256  }
  0x24   : > { %1239 = vsyncadd (%p1104_p9), [#allocation7], 4294967040  ;;  %s1042_s21 = sshll.u32 %s1349_s28, 2  ;;  %vm294_vm0 = vcmask 31744   ;;  %vm299_vm1 = vcmask 326944   ;;  %v1263_v0 = vmov 0.0  }
  0x25   : > { %p289_p6 = scmp.lt.s32.totalorder %s1042_s21, 7  ;;  %295 = vst.msk [vmem:[#allocation2] sm:$0xff] %vm294_vm0, %v1263_v0  ;;  %296 = vst.msk [vmem:[#allocation2 + $0x8] sm:$0xff] %vm294_vm0, %v1263_v0  ;;  %499 = vmatprep.mubr.f32.mxu0 %v1263_v0  ;;  %s1264_s9 = smov 4   ;;  %vm324_vm2 = vcmask 293920   ;;  %vm330_vm3 = vcmask 293888  }
  0x26   : > { %297 = vst.msk [vmem:[#allocation2 + $0x10] sm:$0xff] %vm294_vm0, %v1263_v0  ;;  %298 = vst.msk [vmem:[#allocation2 + $0x18] sm:$0xff] %vm294_vm0, %v1263_v0  ;;  %s1265_s13 = smov 124   ;;  %s1266_s14 = smov 32   ;;  %v416_v13 = vld [vmem:[%s1595_s2] sm:$0xff]  ;;  %v417_v14 = vld [vmem:[%s1595_s2 + $0x8] sm:$0xff] }
  0x27   : > { %300 = vst.msk [vmem:[#allocation2] sm:$0xff] %vm299_vm1, %v1263_v0  ;;  %302 = vst.msk [vmem:[#allocation2 + $0x10] sm:$0xff] %vm299_vm1, %v1263_v0  ;;  %s1610_s21 = smov (!%p289_p6, %s1042_s21), 7  ;;  %s1267_s15 = smov 126   ;;  %v1276_v15 = vmov 0   ;;  %vm338_vm4 = vcmask 589088  }
  0x28   : > { %301 = vst.msk [vmem:[#allocation2 + $0x8] sm:$0xff] %vm299_vm1, %v1263_v0  ;;  %303 = vst.msk [vmem:[#allocation2 + $0x18] sm:$0xff] %vm299_vm1, %v1263_v0  ;;  %s1043_s22 = sshll.u32 %s1610_s21, 3  ;;  %s1268_s16 = smov 68   ;;  %1167 = vset.pattern.permute.xlu0 %v1276_v15  ;;  %1166 = vset.pattern.permute.xlu1 %v1276_v15  ;;  %vm346_vm5 = vcmask 884288   ;;  %vm356_vm6 = vcmask 130048  }
  0x29   : > { %s292_s8 = scalar_lea.vmem %s1593_s0, %s1043_s22  ;;  %s1269_s17 = smov 104   ;;  %vm354_vm7 = vcmask 1048416   ;;  %v408_v32 = vld [vmem:[#allocation6] sm:$0xff]  ;;  %vm428_vm8 = vcmask 195584   ;;  %v409_v34 = vld [vmem:[#allocation6 + $0x8] sm:$0xff]  ;;  %vm520_vm9 = vcmask 15360  }
  0x2a   : > { %v1407_v1 = vld [vmem:[%s292_s8] sm:$0xff]  ;;  %v1409_v2 = vld [vmem:[%s292_s8 + $0x10] sm:$0xff]  ;;  %v1413_v3 = vld [vmem:[%s292_s8 + $0x8] sm:$0xff]  ;;  %s1270_s18 = smov 34   ;;  %s1271_s19 = smov 70   ;;  %vm523_vm10 = vcmask 294160  }
  0x2b   : > { %312 = vrot.lane.b32.xlu0 %v1407_v1, %s1264_s9  ;;  %316 = vrot.lane.b32.xlu1 %v1409_v2, %s1264_s9  ;;  %v1415_v4 = vld [vmem:[%s292_s8 + $0x18] sm:$0xff]  ;;  %s1272_s20 = smov 106   ;;  %s1273_s21 = smov 36   ;;  %vm526_vm11 = vcmask 310560   ;;  %vm541_vm12 = vcmask 130160   ;;  %vm529_vm13 = vcmask 589360  }
  0x2c   : > { %s1274_s22 = smov 72   ;;  %s1275_s23 = smov 108   ;;  %vm532_vm14 = vcmask 605760   ;;  %vm535_vm15 = vcmask 884560   ;;  %vm538_vm0 = vcmask 900960   ;;  %vm546_vm1 = vcmask 261120  }
  0x2d   : > { %v845_v53 = vld [vmem:[%s1598_s5] sm:$0xff]  ;;  %v726_v55 = vld [vmem:[%s1597_s4 + $0x8] sm:$0xff] }
  0x2e   : > { %v717_v54 = vld [vmem:[%s1596_s3] sm:$0xff]  ;;  %v848_v57 = vld [vmem:[%s1599_s6 + $0x8] sm:$0xff] }
  0x2f   : > { %314 = vrot.lane.b32.xlu0 %v1413_v3, %s1264_s9  ;;  %318 = vrot.lane.b32.xlu1 %v1415_v4, %s1264_s9  ;;  %v725_v56 = vld [vmem:[%s1597_s4] sm:$0xff] }
  0x30   : > { %v847_v58 = vld [vmem:[%s1599_s6] sm:$0xff] }
  0x9d   : > { %v313_v5 = vpop.permute.xlu0 %312  ;;  %v317_v6 = vpop.permute.xlu1 %316 }
  0x9e   : > { %325 = vst.msk [vmem:[#allocation2] sm:$0xff] %vm324_vm2, %v313_v5  ;;  %327 = vst.msk [vmem:[#allocation2 + $0x10] sm:$0xff] %vm324_vm2, %v317_v6 }
  0xa1   : > { %v315_v7 = vpop.permute.xlu0 %314  ;;  %v319_v8 = vpop.permute.xlu1 %318 }
  0xa2   : > { %326 = vst.msk [vmem:[#allocation2 + $0x8] sm:$0xff] %vm324_vm2, %v315_v7  ;;  %328 = vst.msk [vmem:[#allocation2 + $0x18] sm:$0xff] %vm324_vm2, %v319_v8  ;;  %vm859_vm2 = vcmask 64512  }
  0xa5   : > { %v383_v9 = vld [vmem:[#allocation2] sm:$0xff]  ;;  %v395_v12 = vld [vmem:[#allocation2 + $0x10] sm:$0xff] }
  0xa6   : > { %385 = vrot.lane.b32.xlu0 %v383_v9, %s1265_s13  ;;  %331 = vst.msk [vmem:[#allocation3] sm:$0xff] %vm330_vm3, %v383_v9 }
  0xa9   : > { %v389_v10 = vld [vmem:[#allocation2 + $0x8] sm:$0xff]  ;;  %v401_v11 = vld [vmem:[#allocation2 + $0x18] sm:$0xff] }
  0xaa   : > { %391 = vrot.lane.b32.xlu1 %v389_v10, %s1266_s14  ;;  %360 = vrot.lane.b32.xlu0 %v383_v9, %s1267_s15 }
  0xae   : > { %397 = vrot.lane.b32.xlu1 %v395_v12, %s1268_s16  ;;  %403 = vrot.lane.b32.xlu0 %v401_v11, %s1269_s17  ;;  %s1277_s17 = smov 112  }
  0xb2   : > { %366 = vrot.lane.b32.xlu1 %v389_v10, %s1270_s18  ;;  %372 = vrot.lane.b32.xlu0 %v395_v12, %s1271_s19  ;;  %s1278_s18 = smov 114   ;;  %s1279_s19 = smov 120  }
  0xb6   : > { %378 = vrot.lane.b32.xlu1 %v401_v11, %s1272_s20  ;;  %335 = vrot.lane.b32.xlu0 %v389_v10, %s1273_s21  ;;  %s1280_s20 = smov 116   ;;  %s1281_s21 = smov 118  }
  0xba   : > { %343 = vrot.lane.b32.xlu1 %v395_v12, %s1274_s22  ;;  %351 = vrot.lane.b32.xlu0 %v401_v11, %s1275_s23  ;;  %s1282_s22 = smov 122  }
  0xbe   : > { %420 = vperm.xlu0 %1167, %v416_v13   ;;  %425 = vperm.xlu1 %1166, %v417_v14  }
 0x118   : > { %v386_v16 = vpop.permute.xlu0 %385 }
 0x119   : > { %388 = vst.msk [vmem:[#allocation3 + $0x20] sm:$0xff] %vm330_vm3, %v386_v16 }
 0x11c   : > { %v392_v17 = vpop.permute.xlu1 %391  ;;  %v361_v18 = vpop.permute.xlu0 %360 }
 0x11d   : > { %394 = vst.msk [vmem:[#allocation3 + $0x20] sm:$0xff] %vm338_vm4, %v392_v17 }
 0x11e   : > { %363 = vst.msk [vmem:[#allocation3 + $0x10] sm:$0xff] %vm330_vm3, %v361_v18  ;;  %vm737_vm3 = vcmask 392192  }
 0x11f   : > { %1082 = vmatprep.mubr.msk.f32.mxu1 %vm737_vm3, %v717_v54 }
 0x120   : > { %v398_v19 = vpop.permute.xlu1 %397  ;;  %v404_v20 = vpop.permute.xlu0 %403 }
 0x121   : > { %400 = vst.msk [vmem:[#allocation3 + $0x20] sm:$0xff] %vm346_vm5, %v398_v19 }
 0x122   : > { %407 = vst.msk [vmem:[#allocation3 + $0x28] sm:$0xff] %vm356_vm6, %v404_v20 }
 0x123   : > { %406 = vst.msk [vmem:[#allocation3 + $0x20] sm:$0xff] %vm354_vm7, %v404_v20 }
 0x124   : > { %v367_v21 = vpop.permute.xlu1 %366  ;;  %v373_v22 = vpop.permute.xlu0 %372 }
 0x125   : > { %369 = vst.msk [vmem:[#allocation3 + $0x10] sm:$0xff] %vm338_vm4, %v367_v21 }
 0x126   : > { %375 = vst.msk [vmem:[#allocation3 + $0x10] sm:$0xff] %vm346_vm5, %v373_v22 }
 0x128   : > { %v379_v23 = vpop.permute.xlu1 %378  ;;  %v336_v24 = vpop.permute.xlu0 %335 }
 0x129   : > { %v415_v25 = vld [vmem:[#allocation3 + $0x28] sm:$0xff]  ;;  %381 = vst.msk [vmem:[#allocation3 + $0x10] sm:$0xff] %vm354_vm7, %v379_v23 }
 0x12a   : > { %382 = vst.msk [vmem:[#allocation3 + $0x18] sm:$0xff] %vm356_vm6, %v379_v23  ;;  %461 = vmatprep.subr.mxu0 %v415_v25  ;;  %v414_v26 = vld [vmem:[#allocation3 + $0x20] sm:$0xff] }
 0x12b   : > { %339 = vst.msk [vmem:[#allocation3] sm:$0xff] %vm338_vm4, %v336_v24  ;;  %462 = vmatpush1.msra.mxu0 %v414_v26  ;;  %vm559_vm4 = vcmask 523520  }
 0x12c   : > { %v344_v27 = vpop.permute.xlu1 %343  ;;  %v352_v28 = vpop.permute.xlu0 %351 }
 0x12d   : > { %347 = vst.msk [vmem:[#allocation3] sm:$0xff] %vm346_vm5, %v344_v27  ;;  %vm710_vm5 = vcmask 916480  }
 0x12e   : > { %357 = vst.msk [vmem:[#allocation3 + $0x8] sm:$0xff] %vm356_vm6, %v352_v28 }
 0x12f   : > { %355 = vst.msk [vmem:[#allocation3] sm:$0xff] %vm354_vm7, %v352_v28  ;;  %vm596_vm7 = vcmask 1048320  }
 0x130   : > { %v412_v30 = vld [vmem:[#allocation3 + $0x10] sm:$0xff] }
 0x131   : > { %v413_v29 = vld [vmem:[#allocation3 + $0x18] sm:$0xff] }
 0x132   : > { %463 = vmatprep.subr.mxu0 %v413_v29 }
 0x133   : > { %464 = vmatpush1.msra.mxu0 %v412_v30 }
 0x135   : > { %v411_v31 = vld [vmem:[#allocation3 + $0x8] sm:$0xff] }
 0x136   : > { %465 = vmatprep.subr.mxu0 %v411_v31  ;;  %v410_v33 = vld [vmem:[#allocation3] sm:$0xff] }
 0x137   : > { %466 = vmatpush1.msra.mxu0 %v410_v33 }
 0x138   : > { %1044 = vmatmul.mubr.msk.f32.vlgmr.msra.gmra.mxu0 %vm428_vm8, %v408_v32 }
 0x139   : > { %505 = vmatprep.mubr.f32.mxu0 %v1263_v0  ;;  %v421_v35 = vpop.permute.xlu0 %420  ;;  %v426_v39 = vpop.permute.xlu1 %425 }
 0x13c   : > { %1045 = vmatmul.mubr.msk.f32.gmra.mxu0 %vm428_vm8, %v409_v34  ;;  %vm651_vm8 = vcmask 932864  }
 0x13d   : > { %1087 = vmatprep.mubr.msk.f32.mxu0 %vm859_vm2, %v845_v53 }
 0x1f8   : > { %v501_v36 = vpop.f32.mrf.mxu0 }
 0x1f9   : > { %v502_v37 = vadd.f32 %v501_v36, %v421_v35 }
 0x1fa   : > { %v503_v38 = vpop.f32.mrf.mxu0 }
 0x1fb   : > { %v512_v40 = vmax.f32 %v502_v37, 0.0  ;;  %v504_v41 = vadd.f32 %v503_v38, %v421_v35 }
 0x1fc   : > { %v507_v42 = vpop.f32.mrf.mxu0 }
 0x1fd   : > { %516 = vst [vmem:[#allocation4] sm:$0xff] %v512_v40  ;;  %v513_v43 = vmax.f32 %v504_v41, 0.0  ;;  %v508_v44 = vadd.f32 %v507_v42, %v426_v39  ;;  %v846_v41 = vld [vmem:[%s1598_s5 + $0x8] sm:$0xff] }
 0x1fe   : > { %521 = vst.msk [vmem:[#allocation4] sm:$0xff] %vm520_vm9, %v1263_v0  ;;  %v509_v45 = vpop.f32.mrf.mxu0  ;;  %v718_v42 = vld [vmem:[%s1596_s3 + $0x8] sm:$0xff] }
 0x1ff   : > { %524 = vst.msk [vmem:[#allocation4] sm:$0xff] %vm523_vm10, %v1263_v0  ;;  %v514_v46 = vmax.f32 %v508_v44, 0.0  ;;  %v510_v47 = vadd.f32 %v509_v45, %v426_v39 }
 0x200   : > { %517 = vst.msk [vmem:[#allocation4 + $0x8] sm:$0xff] %vm356_vm6, %v513_v43 }
 0x201   : > { %527 = vst.msk [vmem:[#allocation4] sm:$0xff] %vm526_vm11, %v1263_v0  ;;  %518 = vst [vmem:[#allocation4 + $0x10] sm:$0xff] %v514_v46  ;;  %v515_v48 = vmax.f32 %v510_v47, 0.0 }
 0x202   : > { %542 = vst.msk [vmem:[#allocation4 + $0x8] sm:$0xff] %vm541_vm12, %v1263_v0 }
 0x203   : > { %530 = vst.msk [vmem:[#allocation4] sm:$0xff] %vm529_vm13, %v1263_v0 }
 0x204   : > { %533 = vst.msk [vmem:[#allocation4] sm:$0xff] %vm532_vm14, %v1263_v0 }
 0x205   : > { %522 = vst.msk [vmem:[#allocation4 + $0x10] sm:$0xff] %vm520_vm9, %v1263_v0  ;;  %vm591_vm9 = vcmask 949248  }
 0x206   : > { %536 = vst.msk [vmem:[#allocation4] sm:$0xff] %vm535_vm15, %v1263_v0 }
 0x207   : > { %525 = vst.msk [vmem:[#allocation4 + $0x10] sm:$0xff] %vm523_vm10, %v1263_v0  ;;  %vm841_vm10 = vcmask 523264  }
 0x208   : > { %519 = vst.msk [vmem:[#allocation4 + $0x18] sm:$0xff] %vm356_vm6, %v515_v48  ;;  %vm572_vm6 = vcmask 785920  }
 0x209   : > { %539 = vst.msk [vmem:[#allocation4] sm:$0xff] %vm538_vm0, %v1263_v0  ;;  %v695_v49 = vld [vmem:[#allocation4 + $0x8] sm:$0xff] }
 0x20a   : > { %528 = vst.msk [vmem:[#allocation4 + $0x10] sm:$0xff] %vm526_vm11, %v1263_v0  ;;  %704 = vrot.lane.b32.xlu0 %v695_v49, %s1277_s17  ;;  %645 = vrot.lane.b32.xlu1 %v695_v49, %s1278_s18  ;;  %vm843_vm11 = vcmask 785408  }
 0x20b   : > { %543 = vst.msk [vmem:[#allocation4 + $0x18] sm:$0xff] %vm541_vm12, %v1263_v0 }
 0x20c   : > { %531 = vst.msk [vmem:[#allocation4 + $0x10] sm:$0xff] %vm529_vm13, %v1263_v0 }
 0x20d   : > { %534 = vst.msk [vmem:[#allocation4 + $0x10] sm:$0xff] %vm532_vm14, %v1263_v0 }
 0x20e   : > { %537 = vst.msk [vmem:[#allocation4 + $0x10] sm:$0xff] %vm535_vm15, %v1263_v0 }
 0x20f   : > { %540 = vst.msk [vmem:[#allocation4 + $0x10] sm:$0xff] %vm538_vm0, %v1263_v0 }
 0x210   : > { %v658_v51 = vld [vmem:[#allocation4] sm:$0xff] }
 0x211   : > { %662 = vrot.lane.b32.xlu0 %v658_v51, %s1265_s13  ;;  %547 = vst.msk [vmem:[#allocation5] sm:$0xff] %vm546_vm1, %v658_v51 }
 0x212   : > { %v697_v50 = vld [vmem:[#allocation4 + $0x18] sm:$0xff] }
 0x213   : > { %708 = vrot.lane.b32.xlu1 %v697_v50, %s1277_s17 }
 0x215   : > { %674 = vrot.lane.b32.xlu0 %v658_v51, %s1279_s19 }
 0x216   : > { %v659_v52 = vld [vmem:[#allocation4 + $0x10] sm:$0xff] }
 0x217   : > { %702 = vrot.lane.b32.xlu1 %v658_v51, %s1277_s17  ;;  %548 = vst.msk [vmem:[#allocation5 + $0x8] sm:$0xff] %vm546_vm1, %v659_v52 }
 0x219   : > { %686 = vrot.lane.b32.xlu0 %v658_v51, %s1280_s20 }
 0x21b   : > { %649 = vrot.lane.b32.xlu1 %v697_v50, %s1278_s18 }
 0x21d   : > { %603 = vrot.lane.b32.xlu0 %v658_v51, %s1267_s15 }
 0x21f   : > { %627 = vrot.lane.b32.xlu1 %v658_v51, %s1281_s21 }
 0x221   : > { %615 = vrot.lane.b32.xlu0 %v658_v51, %s1282_s22 }
 0x223   : > { %589 = vrot.lane.b32.xlu1 %v697_v50, %s1280_s20 }
 0x225   : > { %643 = vrot.lane.b32.xlu0 %v658_v51, %s1278_s18 }
 0x227   : > { %566 = vrot.lane.b32.xlu1 %v658_v51, %s1279_s19 }
 0x229   : > { %553 = vrot.lane.b32.xlu0 %v658_v51, %s1265_s13 }
 0x22b   : > { %664 = vrot.lane.b32.xlu1 %v659_v52, %s1265_s13 }
 0x22d   : > { %706 = vrot.lane.b32.xlu0 %v659_v52, %s1277_s17  ;;  %s1284_s17 = smov 64  }
 0x22f   : > { %676 = vrot.lane.b32.xlu1 %v659_v52, %s1279_s19 }
 0x231   : > { %647 = vrot.lane.b32.xlu0 %v659_v52, %s1278_s18 }
 0x233   : > { %688 = vrot.lane.b32.xlu1 %v659_v52, %s1280_s20 }
 0x235   : > { %555 = vrot.lane.b32.xlu0 %v659_v52, %s1265_s13  ;;  %s1283_s13 = smov 96  }
 0x237   : > { %605 = vrot.lane.b32.xlu1 %v659_v52, %s1267_s15 }
 0x239   : > { %587 = vrot.lane.b32.xlu0 %v659_v52, %s1280_s20 }
 0x23b   : > { %617 = vrot.lane.b32.xlu1 %v659_v52, %s1282_s22 }
 0x23d   : > { %583 = vrot.lane.b32.xlu0 %v658_v51, %s1280_s20 }
 0x23f   : > { %629 = vrot.lane.b32.xlu1 %v659_v52, %s1281_s21 }
 0x241   : > { %829 = vrot.lane.b32.xlu0 %v1413_v3, %s1266_s14  ;;  %s1058_s14 = sshll.u32 %s1349_s28, 8  ;;  %s1285_s28 = smov [#allocation9]  }
 0x242   : > { %s1551_s21 = scalar_lea.hbm %s1600_s7, %s1058_s14  ;;  %s1198_s23 = sshll.u32 %s1285_s28, 4  ;;  %s1199_s23 = int_to_ptr.vmem [resolvable:$false] %s1198_s23 }
 0x243   : > { %568 = vrot.lane.b32.xlu1 %v659_v52, %s1279_s19  ;;  %s1200_s29 = scalar_lea.vmem %s1199_s23, 512 }
 0x245   : > { %837 = vrot.lane.b32.xlu0 %v1415_v4, %s1283_s13  ;;  %s285_s13 = sand.u32 1, %s1250_s25  }
 0x246   : > { %s1041_s15 = sshll.u32 %s285_s13, 4 }
 0x247   : > { %585 = vrot.lane.b32.xlu1 %v695_v49, %s1280_s20  ;;  %s287_s16 = scalar_lea.vmem [#allocation9], %s1041_s15  ;;  %s1553_s20 = scalar_lea.sflag [#allocation8], %s285_s13 }
 0x249   : > { %734 = vperm.xlu0 %1167, %v726_v55  }
 0x24b   : > { %833 = vrot.lane.b32.xlu1 %v1409_v2, %s1284_s17  ;;  %s961_s17 = sshll.u32 %s287_s16, 4  ;;  %s1546_s17 = int_to_ptr.vmem [resolvable:$true] %s961_s17 }
 0x24c   : > { %s1194_s22 = scalar_lea.vmem %s1546_s17, 256  ;;  %p1201_p11 = scmp.lt.s32.totalorder %s1546_s17, %s1199_s23 }
 0x24d   : > { %856 = vperm.xlu0 %1167, %v848_v57   ;;  %p1195_p8 = scmp.ne.s32.totalorder %s1546_s17, %s1194_s22  ;;  %p1202_p12 = scmp.lt.s32.totalorder %s1200_s29, %s1194_s22 }
 0x24f   : > { %729 = vperm.xlu1 %1166, %v725_v56   ;;  %p1196_p9 = pnand %p1195_p8, %p1366_p5  ;;  %p1203_p13 = por %p1202_p12, %p1201_p11 }
 0x251   : > { %p1197_p10 = pneg %p1196_p9 }
 0x253   : > { %851 = vperm.xlu1 %1166, %v847_v58   ;;  %p1204_p0 = pnand %p1203_p13, %p1197_p10 }
 0x27c   : > { %v705_v59 = vpop.permute.xlu0 %704  ;;  %v646_v60 = vpop.permute.xlu1 %645 }
 0x283   : > { %v663_v62 = vpop.permute.xlu0 %662 }
 0x284   : > { %668 = vst.msk [vmem:[#allocation5 + $0x20] sm:$0xff] %vm546_vm1, %v663_v62 }
 0x285   : > { %v709_v61 = vpop.permute.xlu1 %708 }
 0x287   : > { %v675_v0 = vpop.permute.xlu0 %674 }
 0x288   : > { %680 = vst.msk [vmem:[#allocation5 + $0x20] sm:$0xff] %vm559_vm4, %v675_v0 }
 0x289   : > { %v703_v63 = vpop.permute.xlu1 %702 }
 0x28a   : > { %v711_v4 = vsel %vm710_vm5, %v703_v63, %v705_v59 }
 0x28b   : > { %v687_v3 = vpop.permute.xlu0 %686 }
 0x28c   : > { %692 = vst.msk [vmem:[#allocation5 + $0x20] sm:$0xff] %vm572_vm6, %v687_v3 }
 0x28d   : > { %v650_v2 = vpop.permute.xlu1 %649  ;;  %715 = vst.msk [vmem:[#allocation5 + $0x20] sm:$0xff] %vm596_vm7, %v711_v4 }
 0x28f   : > { %v604_v6 = vpop.permute.xlu0 %603 }
 0x290   : > { %609 = vst.msk [vmem:[#allocation5 + $0x10] sm:$0xff] %vm546_vm1, %v604_v6 }
 0x291   : > { %v628_v5 = vpop.permute.xlu1 %627 }
 0x293   : > { %v616_v8 = vpop.permute.xlu0 %615 }
 0x294   : > { %621 = vst.msk [vmem:[#allocation5 + $0x10] sm:$0xff] %vm559_vm4, %v616_v8  ;;  %v723_v24 = vld [vmem:[#allocation5 + $0x20] sm:$0xff] }
 0x295   : > { %v590_v7 = vpop.permute.xlu1 %589  ;;  %633 = vst.msk [vmem:[#allocation5 + $0x10] sm:$0xff] %vm572_vm6, %v628_v5 }
 0x297   : > { %v644_v9 = vpop.permute.xlu0 %643 }
 0x298   : > { %v652_v11 = vsel %vm651_vm8, %v644_v9, %v646_v60 }
 0x299   : > { %v567_v10 = vpop.permute.xlu1 %566  ;;  %656 = vst.msk [vmem:[#allocation5 + $0x10] sm:$0xff] %vm596_vm7, %v652_v11 }
 0x29b   : > { %v554_v13 = vpop.permute.xlu0 %553 }
 0x29c   : > { %560 = vst.msk [vmem:[#allocation5] sm:$0xff] %vm559_vm4, %v554_v13 }
 0x29d   : > { %v665_v12 = vpop.permute.xlu1 %664  ;;  %573 = vst.msk [vmem:[#allocation5] sm:$0xff] %vm572_vm6, %v567_v10 }
 0x29e   : > { %669 = vst.msk [vmem:[#allocation5 + $0x28] sm:$0xff] %vm546_vm1, %v665_v12 }
 0x29f   : > { %v707_v15 = vpop.permute.xlu0 %706 }
 0x2a0   : > { %v712_v18 = vsel %vm710_vm5, %v707_v15, %v709_v61  ;;  %v721_v35 = vld [vmem:[#allocation5 + $0x10] sm:$0xff] }
 0x2a1   : > { %v677_v14 = vpop.permute.xlu1 %676 }
 0x2a2   : > { %681 = vst.msk [vmem:[#allocation5 + $0x28] sm:$0xff] %vm559_vm4, %v677_v14 }
 0x2a3   : > { %v648_v17 = vpop.permute.xlu0 %647 }
 0x2a4   : > { %v653_v27 = vsel %vm651_vm8, %v648_v17, %v650_v2 }
 0x2a5   : > { %v689_v16 = vpop.permute.xlu1 %688 }
 0x2a6   : > { %693 = vst.msk [vmem:[#allocation5 + $0x28] sm:$0xff] %vm572_vm6, %v689_v16 }
 0x2a7   : > { %716 = vst.msk [vmem:[#allocation5 + $0x28] sm:$0xff] %vm596_vm7, %v712_v18  ;;  %v556_v20 = vpop.permute.xlu0 %555 }
 0x2a8   : > { %561 = vst.msk [vmem:[#allocation5 + $0x8] sm:$0xff] %vm559_vm4, %v556_v20 }
 0x2a9   : > { %v606_v19 = vpop.permute.xlu1 %605 }
 0x2aa   : > { %610 = vst.msk [vmem:[#allocation5 + $0x18] sm:$0xff] %vm546_vm1, %v606_v19 }
 0x2ab   : > { %v588_v22 = vpop.permute.xlu0 %587 }
 0x2ac   : > { %v593_v29 = vsel %vm591_vm9, %v588_v22, %v590_v7 }
 0x2ad   : > { %v618_v21 = vpop.permute.xlu1 %617 }
 0x2ae   : > { %622 = vst.msk [vmem:[#allocation5 + $0x18] sm:$0xff] %vm559_vm4, %v618_v21  ;;  %v724_v23 = vld [vmem:[#allocation5 + $0x28] sm:$0xff] }
 0x2af   : > { %1070 = vmatprep.subr.mxu1 %v724_v23  ;;  %v584_v26 = vpop.permute.xlu0 %583 }
 0x2b0   : > { %1071 = vmatpush3.msra.mxu1 %v724_v23 }
 0x2b1   : > { %v630_v25 = vpop.permute.xlu1 %629  ;;  %1072 = vmatprep.subr.mxu1 %v723_v24 }
 0x2b2   : > { %634 = vst.msk [vmem:[#allocation5 + $0x18] sm:$0xff] %vm572_vm6, %v630_v25  ;;  %1073 = vmatpush3.msra.mxu1 %v723_v24 }
 0x2b3   : > { %657 = vst.msk [vmem:[#allocation5 + $0x18] sm:$0xff] %vm596_vm7, %v653_v27  ;;  %v830_v30 = vpop.permute.xlu0 %829 }
 0x2b4   : > { %v840_v34 = vsel %vm546_vm1, %v1407_v1, %v830_v30 }
 0x2b5   : > { %v569_v28 = vpop.permute.xlu1 %568 }
 0x2b6   : > { %574 = vst.msk [vmem:[#allocation5 + $0x8] sm:$0xff] %vm572_vm6, %v569_v28 }
 0x2b7   : > { %598 = vst.msk [vmem:[#allocation5 + $0x8] sm:$0xff] %vm596_vm7, %v593_v29  ;;  %v838_v36 = vpop.permute.xlu0 %837 }
 0x2b9   : > { %v586_v31 = vpop.permute.xlu1 %585 }
 0x2ba   : > { %v592_v32 = vsel %vm591_vm9, %v584_v26, %v586_v31  ;;  %v722_v33 = vld [vmem:[#allocation5 + $0x18] sm:$0xff] }
 0x2bb   : > { %597 = vst.msk [vmem:[#allocation5] sm:$0xff] %vm596_vm7, %v592_v32  ;;  %1074 = vmatprep.subr.mxu1 %v722_v33 }
 0x2bc   : > { %1075 = vmatpush3.msra.mxu1 %v722_v33 }
 0x2bd   : > { %v834_v37 = vpop.permute.xlu1 %833  ;;  %1076 = vmatprep.subr.mxu1 %v721_v35 }
 0x2be   : > { %v842_v38 = vsel %vm841_vm10, %v840_v34, %v834_v37  ;;  %1077 = vmatpush3.msra.mxu1 %v721_v35  ;;  %v720_v39 = vld [vmem:[#allocation5 + $0x8] sm:$0xff] }
 0x2bf   : > { %1078 = vmatprep.subr.mxu1 %v720_v39  ;;  %v844_v40 = vsel %vm843_vm11, %v842_v38, %v838_v36 }
 0x2c0   : > { %1079 = vmatpush3.msra.mxu1 %v720_v39  ;;  %1085 = vmatprep.subr.mxu0 %v844_v40 }
 0x2c1   : > { %1086 = vmatpush3.msra.mxu0 %v844_v40 }
 0x2c2   : > { %1088 = vmatmul.mubr.msk.f32.vlgmr.msra.gmra.mxu0 %vm859_vm2, %v846_v41  ;;  %v719_v1 = vld [vmem:[#allocation5] sm:$0xff] }
 0x2c3   : > { %1080 = vmatprep.subr.mxu1 %v719_v1 }
 0x2c4   : > { %1081 = vmatpush3.msra.mxu1 %v719_v1  ;;  %v735_v43 = vpop.permute.xlu0 %734 }
 0x2c5   : > { %1083 = vmatmul.mubr.msk.f32.vlgmr.msra.gmra.mxu1 %vm737_vm3, %v718_v42 }
 0x2c8   : > { %v857_v47 = vpop.permute.xlu0 %856 }
 0x2ca   : > { %v730_v44 = vpop.permute.xlu1 %729 }
 0x2ce   : > { %v852_v54 = vpop.permute.xlu1 %851 }
 0x382   : > { %v1089_v45 = vpop.f32.mrf.mxu0 }
 0x383   : > { %v938_v51 = vadd.f32 %v1089_v45, %v857_v47 }
 0x384   : > { %v932_v49 = vpop.f32.mrf.mxu0 }
 0x385   : > { %v1084_v46 = vpop.f32.mrf.mxu1  ;;  %v933_v55 = vadd.f32 %v932_v49, %v852_v54 }
 0x386   : > { %v816_v48 = vadd.f32 %v1084_v46, %v735_v43 }
 0x387   : > { %v810_v50 = vpop.f32.mrf.mxu1 }
 0x388   : > { %v820_v52 = vmax.f32 %v816_v48, 0.0  ;;  %v811_v53 = vadd.f32 %v810_v50, %v730_v44 }
 0x38a   : > { %v942_v56 = vadd.f32 %v938_v51, %v820_v52  ;;  %v819_v57 = vmax.f32 %v811_v53, 0.0 }
 0x38c   : > { %v944_v58 = vmax.f32 %v942_v56, 0.0  ;;  %v941_v59 = vadd.f32 %v933_v55, %v819_v57 }
 0x38e   : > { %946 = vst [vmem:[%s287_s16 + $0x8] sm:$0xff] %v944_v58  ;;  %v943_v60 = vmax.f32 %v941_v59, 0.0 }
 0x390   : > { %945 = vst [vmem:[%s287_s16] sm:$0xff] %v943_v60 }
 0x391   : > { %1207 = shalt.err (!%p1204_p0)
}
 0x392   : > { %s1208_s8 = scalar_lea.hbm %s1551_s21, 256  ;;  %s1212_s15 = scalar_lea.hbm %s1600_s7, 512 }
 0x393   : > { %p1209_p1 = scmp.ne.s32.totalorder %s1551_s21, %s1208_s8  ;;  %p1213_p4 = scmp.lt.s32.totalorder %s1551_s21, %s1600_s7 }
 0x394   : > { %p1214_p7 = scmp.lt.s32.totalorder %s1212_s15, %s1208_s8 }
 0x395   : > { %p1210_p2 = pnand %p1209_p1, %p1366_p5 }
 0x396   : > { %p1215_p6 = por %p1214_p7, %p1213_p4 }
 0x397   : > { %p1211_p3 = pneg %p1210_p2 }
 0x399   : > { %p1216_p8 = pnand %p1215_p6, %p1211_p3 }
 0x39b   : > { %1219 = shalt.err (!%p1216_p8)
}
 0x39c   : > { %s1286_s18 = smov 128   ;;  %s1287_s19 = smov 8  }
 0x39d   : > { %1094 = dma.vmem_to_hbm [thread:$0]  (%p1366_p5), %s1546_s17, 256, %s1551_s21, %s1553_s20, %s1286_s18, %s1286_s18, %s1287_s19  }
 0x39e PF: > { %p1106_p9 = scmp.ge.s32.totalorder %s1258_s27, 2  ;;  %s976_s22 = sand.u32 1, %s1246_s24  }
 0x39f   : > { %p1604_p10 = scmp.ne.s32.totalorder %s1602_s12, 0  ;;  %s977_s28 = scalar_lea.sflag [#allocation8], %s976_s22 }
 0x3a1   : > { %p1101_p11 = pnand %p1106_p9, %p1604_p10 }
 0x3a3   : > { %p1102_p12 = pneg %p1101_p11 }
 0x3a5   : > { %1241 = dma.done.wait (%p1102_p12), %s977_s28, 256  }
 0x3a6   : > { %1243 = vsyncadd (%p1102_p12), %s977_s28, 4294967040  ;;  %p18_p13 = scmp.ge.s32.totalorder %s1353_s30, 4   ;;  %s1605_s24 = smov %s1250_s25 }
 0x3a7   : > { %s1606_s25 = smov %s1254_s26  ;;  %s1607_s26 = smov %s1364_s10 }
 0x3a8   : > { %s1608_s27 = smov %s1353_s30  ;;  %20 = sbr.rel (!%p18_p13) target bundleno = 4 (0x4), region = 94 }
 0x3ad   :  { %982 = vsyncpa [#allocation7], 1 }
 0x3ae   :  { %984 = vsyncpa [#allocation7 + $0x1], 1 }
 0x3af   :  { %985 = vsyncpa [#allocation8], 1 }
 0x3b0   :  { %987 = vsyncpa [#allocation8 + $0x1], 1 }

</bundles_post_ra>
